<compile_context>
chip_gen: v5e
topology: v5e:2x2
jax: 0.10.0
libtpu: 0.0.40
codegen_flags: <defaults>
</compile_context>

<pallas_src>
import functools
import math

import jax
import jax.numpy as jnp
from jax.experimental import pallas as pl
from jax.experimental.pallas import tpu as pltpu


# ---------------------------------------------------------------------------
# Kernel
# ---------------------------------------------------------------------------
def critic_kernel(x_ref, w1_ref, b1_ref, w2_ref, b2_ref, w3_ref, b3_ref,
                  o_ref, *, layer1_on_mxu: bool):
    xt = x_ref[...]                                   # (D, TB)  f32

    if layer1_on_mxu:
        # Zero-extend the contraction dim to the pre-padded w1 width (128) and
        # run layer 1 on the (otherwise idle) MXU in bf16 with f32 accumulation.
        pad = w1_ref.shape[1] - xt.shape[0]
        if pad > 0:
            xt_p = jnp.concatenate(
                [xt, jnp.zeros((pad, xt.shape[1]), xt.dtype)], axis=0)
        else:
            xt_p = xt
        h1 = jnp.dot(w1_ref[...], xt_p.astype(jnp.bfloat16),
                     preferred_element_type=jnp.float32)       # (F1, TB) f32
    else:
        # v5e path: keep layer 1 on the VPU (its MXU is weak relative to VPU).
        # D is small for RL observations, so the unrolled loop stays tiny.
        w1 = w1_ref[...]                              # (F1, D)  f32
        h1 = w1[:, 0:1] * xt[0:1, :]
        for k in range(1, xt.shape[0]):
            h1 = h1 + w1[:, k:k + 1] * xt[k:k + 1, :]

    h1 = jnp.maximum(h1 + b1_ref[...], 0.0)           # (F1, TB) f32

    # Layer 2: the dominant cost -> MXU, bf16 operands, f32 accumulation.
    h2 = jnp.dot(w2_ref[...], h1.astype(jnp.bfloat16),
                 preferred_element_type=jnp.float32)  # (F2, TB) f32
    h2 = jnp.maximum(h2 + b2_ref[...], 0.0)

    # Layer 3 (N = 1): VPU multiply + sublane (XLU) reduce -> lane-dense row.
    out = jnp.sum(h2 * w3_ref[...], axis=0, keepdims=True) + b3_ref[...]
    o_ref[...] = out.astype(o_ref.dtype)              # (1, TB)


# ---------------------------------------------------------------------------
# Wrapper
# ---------------------------------------------------------------------------
def _round_up(x, m):
    return ((x + m - 1) // m) * m


def _tpu_kind():
    try:
        return jax.devices()[0].device_kind.lower()
    except Exception:
        return ""


def critic_forward(state, params, *, block_b=None, layer1_on_mxu=None):
    """state: (B, input_dims) f32 -> value: (B, 1) f32 (PyTorch-layout params)."""
    w1, b1, w2, b2, w3, b3 = params                   # w: (out, in), b: (out,)
    B, D = state.shape
    F1, F2 = w1.shape[0], w2.shape[0]

    kind = _tpu_kind()
    is_v5e = ("v5 lite" in kind) or ("v5e" in kind)
    is_v7 = "v7" in kind
    if layer1_on_mxu is None:
        layer1_on_mxu = not is_v5e                    # v5e keeps layer 1 on VPU
    if block_b is None:
        # v7x has 64 MiB VMEM (vs 128) -> smaller default tile.
        block_b = 2048 if is_v7 else 4096

    # Batch tile: lane-dense, multiple of 128; big to amortize ~0.35us/step.
    TB = min(_round_up(block_b, 128), _round_up(B, 128))
    Bp = _round_up(B, TB)

    # Feature-major layout: (D, Bp).  Pad on the transposed array so the pad
    # is absorbed into the (cheap, D is small) transpose pass.
    xt = state.T
    if Bp != B:
        xt = jnp.pad(xt, ((0, 0), (0, Bp - B)))       # padded cols sliced off later

    if layer1_on_mxu:
        K1 = max(128, _round_up(D, 128))
        w1_k = jnp.zeros((F1, K1), jnp.bfloat16).at[:, :D].set(
            w1.astype(jnp.bfloat16))
    else:
        K1 = D
        w1_k = w1                                     # f32, VPU path
    w2_k = w2.astype(jnp.bfloat16)

    b1c = b1.reshape(F1, 1)
    b2c = b2.reshape(F2, 1)
    w3c = w3.reshape(F2, 1)
    b3c = b3.reshape(1, 1)

    const = lambda i: (0, 0)   # weights/biases: resident in VMEM, DMA'd once

    flops = 2 * Bp * (D * F1 + F1 * F2 + F2)
    bytes_accessed = (Bp * (D + 1) * 4
                      + (F1 * K1 + F1 * F2) * 2
                      + (F1 + F2 + F2 + 1) * 4)

    kernel = functools.partial(critic_kernel, layer1_on_mxu=layer1_on_mxu)

    out = pl.pallas_call(
        kernel,
        out_shape=jax.ShapeDtypeStruct((1, Bp), jnp.float32),
        grid=(Bp // TB,),
        in_specs=[
            pl.BlockSpec((D, TB), lambda i: (0, i)),  # state^T: pipelined
            pl.BlockSpec((F1, K1), const),            # w1 (padded bf16 / f32)
            pl.BlockSpec((F1, 1), const),             # b1
            pl.BlockSpec((F2, F1), const),            # w2 (bf16)
            pl.BlockSpec((F2, 1), const),             # b2
            pl.BlockSpec((F2, 1), const),             # w3 (stored as column)
            pl.BlockSpec((1, 1), const),              # b3
        ],
        # Lane-dense output row: unmasked vst stores, tiny VMEM footprint.
        out_specs=pl.BlockSpec((1, TB), lambda i: (0, i)),
        compiler_params=pltpu.CompilerParams(
            # "parallel" lets the grid axis shard across v7x's 2 TensorCores;
            # it is a no-op on single-TC v5e/v6e.
            dimension_semantics=("parallel",),
            vmem_limit_bytes=32 * 1024 * 1024,
        ),
        cost_estimate=pl.CostEstimate(
            flops=flops, transcendentals=0, bytes_accessed=bytes_accessed),
    )(xt, w1_k, b1c, w2_k, b2c, w3c, b3c)

    return out[0, :B].reshape(B, 1)


# ---------------------------------------------------------------------------
# Parameter init (matches PyTorch: xavier_uniform_ weights, zero biases) and
# a pure-JAX reference for correctness checking.
# ---------------------------------------------------------------------------
def xavier_uniform(key, fan_in, fan_out, shape):
    a = math.sqrt(6.0 / (fan_in + fan_out))
    return jax.random.uniform(key, shape, jnp.float32, minval=-a, maxval=a)


def init_params(key, input_dims, fc1_dims=256, fc2_dims=256):
    k1, k2, k3 = jax.random.split(key, 3)
    # PyTorch nn.Linear weight layout: (out_features, in_features).
    w1 = xavier_uniform(k1, input_dims, fc1_dims, (fc1_dims, input_dims))
    b1 = jnp.zeros((fc1_dims,), jnp.float32)
    w2 = xavier_uniform(k2, fc1_dims, fc2_dims, (fc2_dims, fc1_dims))
    b2 = jnp.zeros((fc2_dims,), jnp.float32)
    w3 = xavier_uniform(k3, fc2_dims, 1, (1, fc2_dims))
    b3 = jnp.zeros((1,), jnp.float32)
    return (w1, b1, w2, b2, w3, b3)


def reference_forward(state, params):
    w1, b1, w2, b2, w3, b3 = params
    h1 = jnp.maximum(state @ w1.T + b1, 0.0)
    h2 = jnp.maximum(h1 @ w2.T + b2, 0.0)
    return h2 @ w3.T + b3


# TODO(synk): Adam optimizer step and checkpoint save/load from the PyTorch
# module are training/IO utilities, not part of the forward pass; not ported.

if __name__ == "__main__":
    key = jax.random.PRNGKey(0)
    k_state, k_params = jax.random.split(key)

    batch = 8
    input_dims = 8  # e.g. an 8-dim observation vector

    state = jax.random.normal(k_state, (batch, input_dims), jnp.float32)
    params = init_params(k_params, input_dims)

    out = jax.block_until_ready(critic_forward(state, params))
    ref = reference_forward(state, params)

    assert out.shape == (batch, 1)
    # Layers 1/2 run in bf16 (f32 accumulation) -> ~1e-3 abs error vs f32 ref.
    assert jnp.allclose(out, ref, atol=2e-2, rtol=2e-2), float(
        jnp.max(jnp.abs(out - ref)))

    print("KERNEL_OK")
</pallas_src>

<mosaic_0001>
module attributes {stable_mosaic.version = 11 : i64} {
  func.func @critic_kernel(%arg0: i32, %arg1: memref<8x128xf32, #tpu.memory_space<vmem>>, %arg2: memref<256x128xbf16, #tpu.memory_space<vmem>>, %arg3: memref<256x1xf32, #tpu.memory_space<vmem>>, %arg4: memref<256x256xbf16, #tpu.memory_space<vmem>>, %arg5: memref<256x1xf32, #tpu.memory_space<vmem>>, %arg6: memref<256x1xf32, #tpu.memory_space<vmem>>, %arg7: memref<1x1xf32, #tpu.memory_space<vmem>>, %arg8: memref<1x128xf32, #tpu.memory_space<vmem>>) attributes {dimension_semantics = [#tpu.dimension_semantics<parallel>], iteration_bounds = array<i64: 1>, scalar_prefetch = 0 : i64, scratch_operands = 0 : i64, tpu.core_type = #tpu.core_type<tc>, window_params = [{transform_indices = @transform_0, window_bounds = array<i64: 8, 128>}, {pipeline_mode = #tpu.pipeline_mode<synchronous>, transform_indices = @transform_1, window_bounds = array<i64: 256, 128>}, {pipeline_mode = #tpu.pipeline_mode<synchronous>, transform_indices = @transform_2, window_bounds = array<i64: 256, 1>}, {pipeline_mode = #tpu.pipeline_mode<synchronous>, transform_indices = @transform_3, window_bounds = array<i64: 256, 256>}, {pipeline_mode = #tpu.pipeline_mode<synchronous>, transform_indices = @transform_4, window_bounds = array<i64: 256, 1>}, {pipeline_mode = #tpu.pipeline_mode<synchronous>, transform_indices = @transform_5, window_bounds = array<i64: 256, 1>}, {pipeline_mode = #tpu.pipeline_mode<synchronous>, transform_indices = @transform_6, window_bounds = array<i64: 1, 1>}, {transform_indices = @transform_7, window_bounds = array<i64: 1, 128>}]} {
    %c0 = arith.constant 0 : index
    %c0_0 = arith.constant 0 : index
    %0 = vector.load %arg1[%c0, %c0_0] : memref<8x128xf32, #tpu.memory_space<vmem>>, vector<8x128xf32>
    %cst = arith.constant 0.000000e+00 : f32
    %1 = vector.broadcast %cst : f32 to vector<120x128xf32>
    %2 = tpu.concatenate %0, %1 in 0 : vector<8x128xf32>, vector<120x128xf32> -> vector<128x128xf32>
    %c0_1 = arith.constant 0 : index
    %c0_2 = arith.constant 0 : index
    %3 = vector.load %arg2[%c0_1, %c0_2] : memref<256x128xbf16, #tpu.memory_space<vmem>>, vector<256x128xbf16>
    %4 = arith.truncf %2 : vector<128x128xf32> to vector<128x128xbf16>
    %cst_3 = arith.constant dense<0.000000e+00> : vector<256x128xf32>
    %5 = tpu.matmul %3, %4, %cst_3 {dimension_numbers = #tpu.dot_dimension_numbers<[1], [0], [0], [1], [0, 0, 1, 1], [], []>} : vector<256x128xbf16>, vector<128x128xbf16>, vector<256x128xf32> -> vector<256x128xf32>
    %c0_4 = arith.constant 0 : index
    %c0_5 = arith.constant 0 : index
    %6 = vector.load %arg3[%c0_4, %c0_5] : memref<256x1xf32, #tpu.memory_space<vmem>>, vector<256x1xf32>
    %7 = vector.broadcast %6 : vector<256x1xf32> to vector<256x128xf32>
    %8 = arith.addf %5, %7 : vector<256x128xf32>
    %cst_6 = arith.constant 0.000000e+00 : f32
    %9 = vector.broadcast %cst_6 : f32 to vector<256x128xf32>
    %10 = arith.maximumf %8, %9 : vector<256x128xf32>
    %c0_7 = arith.constant 0 : index
    %c0_8 = arith.constant 0 : index
    %11 = vector.load %arg4[%c0_7, %c0_8] : memref<256x256xbf16, #tpu.memory_space<vmem>>, vector<256x256xbf16>
    %12 = arith.truncf %10 : vector<256x128xf32> to vector<256x128xbf16>
    %cst_9 = arith.constant dense<0.000000e+00> : vector<256x128xf32>
    %13 = tpu.matmul %11, %12, %cst_9 {dimension_numbers = #tpu.dot_dimension_numbers<[1], [0], [0], [1], [0, 0, 1, 1], [], []>} : vector<256x256xbf16>, vector<256x128xbf16>, vector<256x128xf32> -> vector<256x128xf32>
    %c0_10 = arith.constant 0 : index
    %c0_11 = arith.constant 0 : index
    %14 = vector.load %arg5[%c0_10, %c0_11] : memref<256x1xf32, #tpu.memory_space<vmem>>, vector<256x1xf32>
    %15 = vector.broadcast %14 : vector<256x1xf32> to vector<256x128xf32>
    %16 = arith.addf %13, %15 : vector<256x128xf32>
    %cst_12 = arith.constant 0.000000e+00 : f32
    %17 = vector.broadcast %cst_12 : f32 to vector<256x128xf32>
    %18 = arith.maximumf %16, %17 : vector<256x128xf32>
    %c0_13 = arith.constant 0 : index
    %c0_14 = arith.constant 0 : index
    %19 = vector.load %arg6[%c0_13, %c0_14] : memref<256x1xf32, #tpu.memory_space<vmem>>, vector<256x1xf32>
    %20 = vector.broadcast %19 : vector<256x1xf32> to vector<256x128xf32>
    %21 = arith.mulf %18, %20 : vector<256x128xf32>
    %cst_15 = arith.constant dense<0.000000e+00> : vector<128xf32>
    %22 = vector.multi_reduction <add>, %21, %cst_15 [0] : vector<256x128xf32> to vector<128xf32>
    %23 = vector.shape_cast %22 : vector<128xf32> to vector<1x128xf32>
    %c0_16 = arith.constant 0 : index
    %c0_17 = arith.constant 0 : index
    %24 = vector.load %arg7[%c0_16, %c0_17] : memref<1x1xf32, #tpu.memory_space<vmem>>, vector<1x1xf32>
    %25 = vector.broadcast %24 : vector<1x1xf32> to vector<1x128xf32>
    %26 = arith.addf %23, %25 : vector<1x128xf32>
    %c0_18 = arith.constant 0 : index
    %c0_19 = arith.constant 0 : index
    %27 = vector.load %arg8[%c0_18, %c0_19] : memref<1x128xf32, #tpu.memory_space<vmem>>, vector<1x128xf32>
    tpu.vector_store %arg8[%c0_18, %c0_19], %26 {strides = array<i32>} : memref<1x128xf32, #tpu.memory_space<vmem>>, vector<1x128xf32>,
    return
  }
  func.func @transform_0(%arg0: i32) -> (i32, i32) {
    %c0_i32 = arith.constant 0 : i32
    %c0_i32_0 = arith.constant 0 : i32
    return %c0_i32, %arg0 : i32, i32
  }
  func.func @transform_1(%arg0: i32) -> (i32, i32) {
    %c0_i32 = arith.constant 0 : i32
    %c0_i32_0 = arith.constant 0 : i32
    %c0_i32_1 = arith.constant 0 : i32
    return %c0_i32, %c0_i32_0 : i32, i32
  }
  func.func @transform_2(%arg0: i32) -> (i32, i32) {
    %c0_i32 = arith.constant 0 : i32
    %c0_i32_0 = arith.constant 0 : i32
    %c0_i32_1 = arith.constant 0 : i32
    return %c0_i32, %c0_i32_0 : i32, i32
  }
  func.func @transform_3(%arg0: i32) -> (i32, i32) {
    %c0_i32 = arith.constant 0 : i32
    %c0_i32_0 = arith.constant 0 : i32
    %c0_i32_1 = arith.constant 0 : i32
    return %c0_i32, %c0_i32_0 : i32, i32
  }
  func.func @transform_4(%arg0: i32) -> (i32, i32) {
    %c0_i32 = arith.constant 0 : i32
    %c0_i32_0 = arith.constant 0 : i32
    %c0_i32_1 = arith.constant 0 : i32
    return %c0_i32, %c0_i32_0 : i32, i32
  }
  func.func @transform_5(%arg0: i32) -> (i32, i32) {
    %c0_i32 = arith.constant 0 : i32
    %c0_i32_0 = arith.constant 0 : i32
    %c0_i32_1 = arith.constant 0 : i32
    return %c0_i32, %c0_i32_0 : i32, i32
  }
  func.func @transform_6(%arg0: i32) -> (i32, i32) {
    %c0_i32 = arith.constant 0 : i32
    %c0_i32_0 = arith.constant 0 : i32
    %c0_i32_1 = arith.constant 0 : i32
    return %c0_i32, %c0_i32_0 : i32, i32
  }
  func.func @transform_7(%arg0: i32) -> (i32, i32) {
    %c0_i32 = arith.constant 0 : i32
    %c0_i32_0 = arith.constant 0 : i32
    return %c0_i32, %arg0 : i32, i32
  }
}

</mosaic_0001>

<bundles_post_ra>
// kernel: tpu_custom_call.1
= control target key start
LH: loop header
LB: loop body
LE: loop exit
PB: predicated region body
PF: predicated region fallthrough
CT: control target
= control target key end

     0   :  { %s2482_s0 = inlined_call_operand.vmem [shape: f32[8,128], index: 0, kind: input, shape index: {}]   ;;  %s2483_s1 = inlined_call_operand.vmem [shape: bf16[256,128], index: 1, kind: input, shape index: {}]   ;;  %s2484_s2 = inlined_call_operand.vmem [shape: f32[256,1], index: 2, kind: input, shape index: {}]   ;;  %s2485_s3 = inlined_call_operand.vmem [shape: bf16[256,256], index: 3, kind: input, shape index: {}]   ;;  %s2486_s4 = inlined_call_operand.vmem [shape: f32[256,1], index: 4, kind: input, shape index: {}]   ;;  %s2487_s5 = inlined_call_operand.vmem [shape: f32[256,1], index: 5, kind: input, shape index: {}]   ;;  %s2488_s6 = inlined_call_operand.<no memory space> [shape: f32[1,1], index: 6, kind: input, shape index: {}]   ;;  %s2489_s7 = inlined_call_operand.hbm [shape: f32[1,128], index: 7, kind: output, shape index: {}]  }
   0x1   :  { %v12_v0 = vstv %s2488_s6 }
   0x2   :  { %13 = vst [vmem:[#allocation2] sm:$0x1] %v12_v0 }
   0x3   :  { %v68_v1 = vld [vmem:[%s2484_s2 + $0x20] sm:$0xff]  ;;  %v66_v2 = vld [vmem:[%s2484_s2 + $0x10] sm:$0xff]  ;;  %v1657_v4 = vmov 0  }
   0x4   :  { %v64_v3 = vld [vmem:[%s2484_s2] sm:$0xff]  ;;  %1630 = vset.pattern.permute.xlu2 %v1657_v4  ;;  %1629 = vset.pattern.permute.xlu1 %v1657_v4 }
   0x5   :  { %v29_v5 = vld [vmem:[%s2482_s0] sm:$0xff]  ;;  %1628 = vset.pattern.permute.xlu0 %v1657_v4  ;;  %118 = vperm.xlu2 %1630, %v68_v1  }
   0x6   :  { %v62_v6 = vpack.c.bf16 0.0, %v29_v5  ;;  %108 = vperm.xlu1 %1629, %v66_v2   ;;  %98 = vperm.xlu0 %1628, %v64_v3   ;;  %v1561_v7 = vld [vmem:[%s2483_s1] sm:$0xff] }
   0x8   :  { %359 = vmatpush.bf16.msra.mxu0 %v62_v6  ;;  %1609 = vmatpush.bf16.msra.mxu3 %v62_v6 }
   0x9   :  { %14 = vsyncpa [#allocation4], 0  ;;  %v69_v8 = vld [vmem:[%s2484_s2 + $0x28] sm:$0xff]  ;;  %v67_v9 = vld [vmem:[%s2484_s2 + $0x18] sm:$0xff]  ;;  %s1360_s30 = sshll.u32 %s2489_s7, 4  ;;  %s1361_s30 = int_to_ptr.hbm [resolvable:$true] %s1360_s30 }
   0xa   :  { %v65_v10 = vld [vmem:[%s2484_s2 + $0x8] sm:$0xff]  ;;  %v72_v11 = vld [vmem:[%s2484_s2 + $0x40] sm:$0xff]  ;;  %v71_v12 = vld [vmem:[%s2484_s2 + $0x38] sm:$0xff] }
   0xb   :  { %360 = vmatmul.bf16.vlgmr.msra.gmra.mxu0 %v1561_v7  ;;  %v70_v13 = vld [vmem:[%s2484_s2 + $0x30] sm:$0xff]  ;;  %v1562_v14 = vld [vmem:[%s2483_s1 + $0x8] sm:$0xff]  ;;  %v75_v15 = vld [vmem:[%s2484_s2 + $0x58] sm:$0xff] }
   0xc   :  { %v74_v16 = vld [vmem:[%s2484_s2 + $0x50] sm:$0xff]  ;;  %v73_v17 = vld [vmem:[%s2484_s2 + $0x48] sm:$0xff]  ;;  %v76_v20 = vld [vmem:[%s2484_s2 + $0x60] sm:$0xff] }
   0xd   :  { %123 = vperm.xlu2 %1630, %v69_v8   ;;  %v78_v18 = vld [vmem:[%s2484_s2 + $0x70] sm:$0xff]  ;;  %v77_v19 = vld [vmem:[%s2484_s2 + $0x68] sm:$0xff]  ;;  %v80_v24 = vld [vmem:[%s2484_s2 + $0x80] sm:$0xff] }
   0xe   :  { %113 = vperm.xlu1 %1629, %v67_v9   ;;  %103 = vperm.xlu0 %1628, %v65_v10   ;;  %v1563_v21 = vld [vmem:[%s2483_s1 + $0x10] sm:$0xff]  ;;  %v1574_v22 = vld [vmem:[%s2483_s1 + $0x68] sm:$0xff]  ;;  %v79_v25 = vld [vmem:[%s2484_s2 + $0x78] sm:$0xff] }
   0xf   :  { %425 = vmatmul.bf16.vlgmr.msra.gmra.mxu3 %v1574_v22  ;;  %v81_v23 = vld [vmem:[%s2484_s2 + $0x88] sm:$0xff]  ;;  %v84_v26 = vld [vmem:[%s2484_s2 + $0xa0] sm:$0xff]  ;;  %v83_v27 = vld [vmem:[%s2484_s2 + $0x98] sm:$0xff] }
  0x10   :  { %v82_v28 = vld [vmem:[%s2484_s2 + $0x90] sm:$0xff]  ;;  %v1564_v29 = vld [vmem:[%s2483_s1 + $0x18] sm:$0xff]  ;;  %v85_v33 = vld [vmem:[%s2484_s2 + $0xa8] sm:$0xff] }
  0x11   :  { %v1575_v30 = vld [vmem:[%s2483_s1 + $0x70] sm:$0xff]  ;;  %v87_v31 = vld [vmem:[%s2484_s2 + $0xb8] sm:$0xff]  ;;  %v89_v35 = vld [vmem:[%s2484_s2 + $0xc8] sm:$0xff] }
  0x12   :  { %v86_v32 = vld [vmem:[%s2484_s2 + $0xb0] sm:$0xff]  ;;  %v88_v36 = vld [vmem:[%s2484_s2 + $0xc0] sm:$0xff]  ;;  %v1576_v38 = vld [vmem:[%s2483_s1 + $0x78] sm:$0xff] }
  0x13   :  { %v94_v34 = vld [vmem:[%s2484_s2 + $0xf0] sm:$0xff]  ;;  %v1565_v37 = vld [vmem:[%s2483_s1 + $0x20] sm:$0xff]  ;;  %v93_v39 = vld [vmem:[%s2484_s2 + $0xe8] sm:$0xff] }
  0x14   :  { %v92_v40 = vld [vmem:[%s2484_s2 + $0xe0] sm:$0xff]  ;;  %v95_v41 = vld [vmem:[%s2484_s2 + $0xf8] sm:$0xff]  ;;  %v90_v44 = vld [vmem:[%s2484_s2 + $0xd0] sm:$0xff] }
  0x15   :  { %138 = vperm.xlu2 %1630, %v72_v11   ;;  %v521_v42 = vld [vmem:[%s2486_s4] sm:$0xff]  ;;  %v91_v43 = vld [vmem:[%s2484_s2 + $0xd8] sm:$0xff]  ;;  %v1566_v45 = vld [vmem:[%s2483_s1 + $0x28] sm:$0xff] }
  0x16   :  { %133 = vperm.xlu1 %1629, %v71_v12   ;;  %128 = vperm.xlu0 %1628, %v70_v13   ;;  %v524_v46 = vld [vmem:[%s2486_s4 + $0x18] sm:$0xff]  ;;  %v523_v47 = vld [vmem:[%s2486_s4 + $0x10] sm:$0xff]  ;;  %v522_v48 = vld [vmem:[%s2486_s4 + $0x8] sm:$0xff] }
  0x17   :  { %v527_v49 = vld [vmem:[%s2486_s4 + $0x30] sm:$0xff]  ;;  %v526_v50 = vld [vmem:[%s2486_s4 + $0x28] sm:$0xff]  ;;  %v525_v51 = vld [vmem:[%s2486_s4 + $0x20] sm:$0xff] }
  0x18   :  { %v1567_v52 = vld [vmem:[%s2483_s1 + $0x30] sm:$0xff]  ;;  %v530_v53 = vld [vmem:[%s2486_s4 + $0x48] sm:$0xff]  ;;  %v529_v54 = vld [vmem:[%s2486_s4 + $0x40] sm:$0xff] }
  0x19   :  { %v528_v55 = vld [vmem:[%s2486_s4 + $0x38] sm:$0xff]  ;;  %v533_v56 = vld [vmem:[%s2486_s4 + $0x60] sm:$0xff]  ;;  %v531_v58 = vld [vmem:[%s2486_s4 + $0x50] sm:$0xff] }
  0x1a   :  { %v532_v57 = vld [vmem:[%s2486_s4 + $0x58] sm:$0xff]  ;;  %v535_v0 = vld [vmem:[%s2486_s4 + $0x70] sm:$0xff]  ;;  %v534_v1 = vld [vmem:[%s2486_s4 + $0x68] sm:$0xff] }
  0x1b   :  { %365 = vmatmul.bf16.gmra.mxu0 %v1562_v14  ;;  %v1568_v59 = vld [vmem:[%s2483_s1 + $0x38] sm:$0xff]  ;;  %v539_v4 = vld [vmem:[%s2486_s4 + $0x90] sm:$0xff]  ;;  %v538_v6 = vld [vmem:[%s2486_s4 + $0x88] sm:$0xff] }
  0x1c   :  { %v536_v63 = vld [vmem:[%s2486_s4 + $0x78] sm:$0xff]  ;;  %v537_v7 = vld [vmem:[%s2486_s4 + $0x80] sm:$0xff]  ;;  %v542_v13 = vld [vmem:[%s2486_s4 + $0xa8] sm:$0xff] }
  0x1d   :  { %153 = vperm.xlu2 %1630, %v75_v15   ;;  %v1569_v8 = vld [vmem:[%s2483_s1 + $0x40] sm:$0xff]  ;;  %v540_v15 = vld [vmem:[%s2486_s4 + $0x98] sm:$0xff] }
  0x1e   :  { %148 = vperm.xlu1 %1629, %v74_v16   ;;  %143 = vperm.xlu0 %1628, %v73_v17   ;;  %v541_v14 = vld [vmem:[%s2486_s4 + $0xa0] sm:$0xff] }
  0x1f   :  { %430 = vmatmul.bf16.gmra.mxu3 %v1575_v30 }
  0x25   :  { %168 = vperm.xlu2 %1630, %v78_v18  }
  0x26   :  { %163 = vperm.xlu1 %1629, %v77_v19   ;;  %158 = vperm.xlu0 %1628, %v76_v20  }
  0x2b   :  { %370 = vmatmul.bf16.gmra.mxu0 %v1563_v21 }
  0x2d   :  { %183 = vperm.xlu2 %1630, %v81_v23   ;;  %v545_v23 = vld [vmem:[%s2486_s4 + $0xc0] sm:$0xff] }
  0x2e   :  { %178 = vperm.xlu1 %1629, %v80_v24   ;;  %173 = vperm.xlu0 %1628, %v79_v25   ;;  %v544_v24 = vld [vmem:[%s2486_s4 + $0xb8] sm:$0xff]  ;;  %v543_v25 = vld [vmem:[%s2486_s4 + $0xb0] sm:$0xff] }
  0x2f   :  { %435 = vmatmul.bf16.gmra.mxu3 %v1576_v38 }
  0x35   :  { %198 = vperm.xlu2 %1630, %v84_v26  }
  0x36   :  { %193 = vperm.xlu1 %1629, %v83_v27   ;;  %188 = vperm.xlu0 %1628, %v82_v28   ;;  %v1570_v27 = vld [vmem:[%s2483_s1 + $0x48] sm:$0xff] }
  0x3b   :  { %375 = vmatmul.bf16.gmra.mxu0 %v1564_v29 }
  0x3d   :  { %213 = vperm.xlu2 %1630, %v87_v31  }
  0x3e   :  { %208 = vperm.xlu1 %1629, %v86_v32   ;;  %203 = vperm.xlu0 %1628, %v85_v33   ;;  %v548_v32 = vld [vmem:[%s2486_s4 + $0xd8] sm:$0xff] }
  0x45   :  { %248 = vperm.xlu2 %1630, %v94_v34   ;;  %v547_v34 = vld [vmem:[%s2486_s4 + $0xd0] sm:$0xff] }
  0x46   :  { %223 = vperm.xlu1 %1629, %v89_v35   ;;  %218 = vperm.xlu0 %1628, %v88_v36   ;;  %v546_v35 = vld [vmem:[%s2486_s4 + $0xc8] sm:$0xff] }
  0x4b   :  { %380 = vmatmul.bf16.gmra.mxu0 %v1565_v37 }
  0x4d   :  { %243 = vperm.xlu2 %1630, %v93_v39  }
  0x4e   :  { %238 = vperm.xlu1 %1629, %v92_v40   ;;  %253 = vperm.xlu0 %1628, %v95_v41   ;;  %v551_v41 = vld [vmem:[%s2486_s4 + $0xf0] sm:$0xff] }
  0x55   :  { %555 = vperm.xlu2 %1630, %v521_v42   ;;  %v550_v42 = vld [vmem:[%s2486_s4 + $0xe8] sm:$0xff] }
  0x56   :  { %233 = vperm.xlu1 %1629, %v91_v43   ;;  %228 = vperm.xlu0 %1628, %v90_v44   ;;  %v549_v43 = vld [vmem:[%s2486_s4 + $0xe0] sm:$0xff] }
  0x5b   :  { %385 = vmatmul.bf16.gmra.mxu0 %v1566_v45 }
  0x5d   :  { %570 = vperm.xlu2 %1630, %v524_v46  }
  0x5e   :  { %565 = vperm.xlu1 %1629, %v523_v47   ;;  %560 = vperm.xlu0 %1628, %v522_v48   ;;  %v1571_v47 = vld [vmem:[%s2483_s1 + $0x50] sm:$0xff] }
  0x5f   :  { %v1873_v62 = vpop.permute.xlu2 %118 }
  0x65   :  { %585 = vperm.xlu2 %1630, %v527_v49   ;;  %v1084_v49 = vld [vmem:[%s2487_s5 + $0x8] sm:$0xff] }
  0x66   :  { %580 = vperm.xlu1 %1629, %v526_v50   ;;  %575 = vperm.xlu0 %1628, %v525_v51   ;;  %v1083_v51 = vld [vmem:[%s2487_s5] sm:$0xff] }
  0x67   :  { %v1887_v5 = vpop.permute.xlu2 %123 }
  0x6b   :  { %390 = vmatmul.bf16.gmra.mxu0 %v1567_v52  ;;  %v552_v52 = vld [vmem:[%s2486_s4 + $0xf8] sm:$0xff] }
  0x6d   :  { %600 = vperm.xlu2 %1630, %v530_v53  }
  0x6e   :  { %595 = vperm.xlu1 %1629, %v529_v54   ;;  %590 = vperm.xlu0 %1628, %v528_v55  }
  0x6f   :  { %v1911_v16 = vpop.permute.xlu2 %138 }
  0x75   :  { %615 = vperm.xlu2 %1630, %v533_v56  }
  0x76   :  { %610 = vperm.xlu1 %1629, %v532_v57   ;;  %605 = vperm.xlu0 %1628, %v531_v58  }
  0x77   :  { %v1931_v28 = vpop.permute.xlu2 %153 }
  0x78   :  { %v109_v60 = vpop.permute.xlu1 %108  ;;  %v99_v61 = vpop.permute.xlu0 %98 }
  0x7b   :  { %395 = vmatmul.bf16.gmra.mxu0 %v1568_v59 }
  0x7d   :  { %630 = vperm.xlu2 %1630, %v536_v63   ;;  %v1086_v63 = vld [vmem:[%s2487_s5 + $0x18] sm:$0xff] }
  0x7e   :  { %625 = vperm.xlu1 %1629, %v535_v0   ;;  %620 = vperm.xlu0 %1628, %v534_v1  }
  0x7f   :  { %v1946_v38 = vpop.permute.xlu2 %168 }
  0x80   :  { %v114_v2 = vpop.permute.xlu1 %113  ;;  %v104_v3 = vpop.permute.xlu0 %103 }
  0x85   :  { %645 = vperm.xlu2 %1630, %v539_v4  }
  0x86   :  { %640 = vperm.xlu1 %1629, %v538_v6   ;;  %635 = vperm.xlu0 %1628, %v537_v7  }
  0x87   :  { %v1969_v50 = vpop.permute.xlu2 %183 }
  0x88   :  { %v361_v9 = vpop.f32.mrf.mxu0  ;;  %v1898_v11 = vpop.permute.xlu1 %133 }
  0x89   :  { %v362_v10 = vadd.f32 %v361_v9, %v99_v61  ;;  %v1900_v12 = vpop.permute.xlu0 %128  ;;  %v1087_v61 = vld [vmem:[%s2487_s5 + $0x20] sm:$0xff]  ;;  %v1089_v9 = vld [vmem:[%s2487_s5 + $0x30] sm:$0xff] }
  0x8b   :  { %400 = vmatmul.bf16.gmra.mxu0 %v1569_v8  ;;  %v441_v21 = vmax.f32 %v362_v10, 0.0  ;;  %v1090_v8 = vld [vmem:[%s2487_s5 + $0x38] sm:$0xff]  ;;  %v1088_v10 = vld [vmem:[%s2487_s5 + $0x28] sm:$0xff] }
  0x8d   :  { %660 = vperm.xlu2 %1630, %v542_v13  }
  0x8e   :  { %655 = vperm.xlu1 %1629, %v541_v14   ;;  %650 = vperm.xlu0 %1628, %v540_v15  }
  0x90   :  { %v363_v17 = vpop.f32.mrf.mxu0  ;;  %v1913_v19 = vpop.permute.xlu1 %148 }
  0x91   :  { %v364_v18 = vadd.f32 %v363_v17, %v104_v3  ;;  %v1915_v20 = vpop.permute.xlu0 %143  ;;  %v1572_v3 = vld [vmem:[%s2483_s1 + $0x58] sm:$0xff] }
  0x92   :  { %v1977_v53 = vpop.f32.mrf.mxu3 }
  0x93   :  { %v442_v22 = vmax.f32 %v364_v18, 0.0 }
  0x95   :  { %v1926_v26 = vpack.c.bf16 %v442_v22, %v441_v21  ;;  %675 = vperm.xlu2 %1630, %v545_v23   ;;  %v1093_v22 = vld [vmem:[%s2487_s5 + $0x50] sm:$0xff] }
  0x96   :  { %670 = vperm.xlu1 %1629, %v544_v24   ;;  %665 = vperm.xlu0 %1628, %v543_v25   ;;  %v1092_v24 = vld [vmem:[%s2487_s5 + $0x48] sm:$0xff]  ;;  %v1091_v25 = vld [vmem:[%s2487_s5 + $0x40] sm:$0xff] }
  0x98   :  { %v366_v29 = vpop.f32.mrf.mxu0  ;;  %v1933_v31 = vpop.permute.xlu1 %163 }
  0x99   :  { %v367_v30 = vadd.f32 %v366_v29, %v109_v60  ;;  %v1938_v33 = vpop.permute.xlu0 %158  ;;  %v1573_v29 = vld [vmem:[%s2483_s1 + $0x60] sm:$0xff] }
  0x9a   :  { %v1994_v0 = vpop.f32.mrf.mxu3 }
  0x9b   :  { %405 = vmatmul.bf16.gmra.mxu0 %v1570_v27  ;;  %v443_v39 = vmax.f32 %v367_v30, 0.0 }
  0x9d   :  { %690 = vperm.xlu2 %1630, %v548_v32  }
  0x9e   :  { %685 = vperm.xlu1 %1629, %v547_v34   ;;  %680 = vperm.xlu0 %1628, %v546_v35   ;;  %v1096_v34 = vld [vmem:[%s2487_s5 + $0x68] sm:$0xff]  ;;  %v1095_v35 = vld [vmem:[%s2487_s5 + $0x60] sm:$0xff] }
  0xa0   :  { %v368_v36 = vpop.f32.mrf.mxu0  ;;  %v1957_v44 = vpop.permute.xlu1 %178 }
  0xa1   :  { %v369_v37 = vadd.f32 %v368_v36, %v114_v2  ;;  %v1961_v46 = vpop.permute.xlu0 %173  ;;  %v1998_v2 = vpop.permute.xlu2 %198  ;;  %v1094_v36 = vld [vmem:[%s2487_s5 + $0x58] sm:$0xff] }
  0xa2   :  { %v431_v13 = vpop.f32.mrf.mxu3 }
  0xa3   :  { %v444_v40 = vmax.f32 %v369_v37, 0.0 }
  0xa5   :  { %v1959_v45 = vpack.c.bf16 %v444_v40, %v443_v39  ;;  %705 = vperm.xlu2 %1630, %v551_v41  }
  0xa6   :  { %700 = vperm.xlu1 %1629, %v550_v42   ;;  %695 = vperm.xlu0 %1628, %v549_v43  }
  0xa8   :  { %v371_v48 = vpop.f32.mrf.mxu0  ;;  %v1980_v55 = vpop.permute.xlu1 %193 }
  0xa9   :  { %v372_v54 = vadd.f32 %v371_v48, %v1873_v62  ;;  %v1982_v56 = vpop.permute.xlu0 %188  ;;  %v1085_v62 = vld [vmem:[%s2487_s5 + $0x10] sm:$0xff] }
  0xaa   :  { %v433_v27 = vpop.f32.mrf.mxu3 }
  0xab   :  { %410 = vmatmul.bf16.gmra.mxu0 %v1571_v47  ;;  %v445_v59 = vmax.f32 %v372_v54, 0.0  ;;  %v1098_v54 = vld [vmem:[%s2487_s5 + $0x78] sm:$0xff] }
  0xad   :  { %1122 = vperm.xlu2 %1630, %v1084_v49  }
  0xae   :  { %1117 = vperm.xlu1 %1629, %v1083_v51   ;;  %710 = vperm.xlu0 %1628, %v552_v52   ;;  %v1099_v51 = vld [vmem:[%s2487_s5 + $0x80] sm:$0xff] }
  0xb0   :  { %v373_v57 = vpop.f32.mrf.mxu0 }
  0xb1   :  { %v374_v58 = vadd.f32 %v373_v57, %v1887_v5  ;;  %v2003_v5 = vpop.permute.xlu1 %208  ;;  %v2006_v7 = vpop.permute.xlu0 %203 }
  0xb2   :  { %v436_v37 = vpop.f32.mrf.mxu3 }
  0xb3   :  { %v446_v60 = vmax.f32 %v374_v58, 0.0 }
  0xb5   :  { %v1996_v1 = vpack.c.bf16 %v446_v60, %v445_v59  ;;  %1137 = vperm.xlu2 %1630, %v1087_v61  }
  0xb6   :  { %1132 = vperm.xlu1 %1629, %v1086_v63   ;;  %1127 = vperm.xlu0 %1628, %v1085_v62  }
  0xb8   :  { %v376_v4 = vpop.f32.mrf.mxu0 }
  0xb9   :  { %v377_v6 = vadd.f32 %v376_v4, %v1900_v12  ;;  %v2017_v12 = vpop.permute.xlu2 %213  ;;  %v2020_v18 = vpop.permute.xlu1 %223 }
  0xba   :  { %v2025_v23 = vpop.permute.xlu0 %218  ;;  %v438_v58 = vpop.f32.mrf.mxu3 }
  0xbb   :  { %415 = vmatmul.bf16.gmra.mxu0 %v1572_v3  ;;  %v447_v17 = vmax.f32 %v377_v6, 0.0 }
  0xbd   :  { %1152 = vperm.xlu2 %1630, %v1090_v8  }
  0xbe   :  { %1147 = vperm.xlu1 %1629, %v1089_v9   ;;  %1142 = vperm.xlu0 %1628, %v1088_v10  }
  0xc0   :  { %v378_v14 = vpop.f32.mrf.mxu0 }
  0xc1   :  { %v379_v15 = vadd.f32 %v378_v14, %v1898_v11  ;;  %v249_v32 = vpop.permute.xlu2 %248  ;;  %v239_v39 = vpop.permute.xlu1 %238  ;;  %v1102_v14 = vld [vmem:[%s2487_s5 + $0x98] sm:$0xff] }
  0xc2   :  { %v254_v40 = vpop.permute.xlu0 %253  ;;  %v437_v47 = vadd.f32 %v436_v37, %v249_v32  ;;  %v432_v57 = vadd.f32 %v431_v13, %v239_v39  ;;  %v1108_v32 = vld [vmem:[%s2487_s5 + $0xc8] sm:$0xff]  ;;  %v1111_v37 = vld [vmem:[%s2487_s5 + $0xe0] sm:$0xff]  ;;  %v1110_v39 = vld [vmem:[%s2487_s5 + $0xd8] sm:$0xff] }
  0xc3   :  { %v448_v21 = vmax.f32 %v379_v15, 0.0  ;;  %v439_v60 = vadd.f32 %v438_v58, %v254_v40  ;;  %v1101_v15 = vld [vmem:[%s2487_s5 + $0x90] sm:$0xff]  ;;  %v1344_v58 = vld [vmem:[#allocation2] sm:$0x1] }
  0xc4   :  { %v469_v6 = vmax.f32 %v432_v57, 0.0  ;;  %v1109_v40 = vld [vmem:[%s2487_s5 + $0xd0] sm:$0xff] }
  0xc5   :  { %v2033_v11 = vpack.c.bf16 %v448_v21, %v447_v17  ;;  %1167 = vperm.xlu2 %1630, %v1093_v22   ;;  %v472_v62 = vmax.f32 %v439_v60, 0.0  ;;  %v1100_v17 = vld [vmem:[%s2487_s5 + $0x88] sm:$0xff] }
  0xc6   :  { %1162 = vperm.xlu1 %1629, %v1092_v24   ;;  %1157 = vperm.xlu0 %1628, %v1091_v25   ;;  %v1105_v25 = vld [vmem:[%s2487_s5 + $0xb0] sm:$0xff] }
  0xc8   :  { %v381_v30 = vpop.f32.mrf.mxu0 }
  0xc9   :  { %v382_v41 = vadd.f32 %v381_v30, %v1911_v16  ;;  %v244_v52 = vpop.permute.xlu2 %243  ;;  %v1097_v16 = vld [vmem:[%s2487_s5 + $0x70] sm:$0xff]  ;;  %v234_v63 = vpop.permute.xlu1 %233 }
  0xca   :  { %v434_v59 = vadd.f32 %v433_v27, %v244_v52  ;;  %v229_v3 = vpop.permute.xlu0 %228  ;;  %v429_v9 = vadd.f32 %v1994_v0, %v234_v63  ;;  %v1104_v27 = vld [vmem:[%s2487_s5 + $0xa8] sm:$0xff] }
  0xcb   :  { %420 = vmatmul.bf16.gmra.mxu0 %v1573_v29  ;;  %v449_v48 = vmax.f32 %v382_v41, 0.0  ;;  %v427_v8 = vadd.f32 %v1977_v53, %v229_v3  ;;  %v1103_v29 = vld [vmem:[%s2487_s5 + $0xa0] sm:$0xff] }
  0xcc   :  { %v470_v10 = vmax.f32 %v434_v59, 0.0  ;;  %v468_v21 = vmax.f32 %v429_v9, 0.0 }
  0xcd   :  { %1182 = vperm.xlu2 %1630, %v1096_v34   ;;  %v467_v53 = vmax.f32 %v427_v8, 0.0  ;;  %v1107_v34 = vld [vmem:[%s2487_s5 + $0xc0] sm:$0xff] }
  0xce   :  { %1177 = vperm.xlu1 %1629, %v1095_v35   ;;  %1172 = vperm.xlu0 %1628, %v1094_v36   ;;  %v2074_v0 = vpack.c.bf16 %v470_v10, %v469_v6  ;;  %v1106_v35 = vld [vmem:[%s2487_s5 + $0xb8] sm:$0xff] }
  0xcf   :  { %v2077_v24 = vpack.c.bf16 %v468_v21, %v467_v53  ;;  %v1580_v53 = vld [vmem:[%s2485_s3 + $0x14] sm:$0xf0] }
  0xd0   :  { %v383_v42 = vpop.f32.mrf.mxu0 }
  0xd1   :  { %v384_v43 = vadd.f32 %v383_v42, %v1915_v20  ;;  %v471_v20 = vmax.f32 %v437_v47, 0.0  ;;  %v1114_v42 = vld [vmem:[%s2487_s5 + $0xf8] sm:$0xff]  ;;  %v1112_v47 = vld [vmem:[%s2487_s5 + $0xe8] sm:$0xff] }
  0xd3   :  { %v450_v49 = vmax.f32 %v384_v43, 0.0  ;;  %v2062_v13 = vpack.c.bf16 %v472_v62, %v471_v20  ;;  %v1113_v43 = vld [vmem:[%s2487_s5 + $0xf0] sm:$0xff] }
  0xd5   :  { %v2058_v61 = vpack.c.bf16 %v450_v49, %v449_v48  ;;  %1197 = vperm.xlu2 %1630, %v1099_v51   ;;  %962 = vmatpush.bf16.msra.mxu2 %v2062_v13 }
  0xd6   :  { %1192 = vperm.xlu1 %1629, %v1098_v54   ;;  %1187 = vperm.xlu0 %1628, %v1097_v16  }
  0xd8   :  { %v386_v4 = vpop.f32.mrf.mxu0 }
  0xd9   :  { %963 = vmatpush.bf16.msra.mxu2 %v2074_v0  ;;  %v387_v63 = vadd.f32 %v386_v4, %v1913_v19 }
  0xdb   :  { %v451_v6 = vmax.f32 %v387_v63, 0.0 }
  0xdd   :  { %1212 = vperm.xlu2 %1630, %v1102_v14   ;;  %964 = vmatpush.bf16.msra.mxu2 %v2077_v24 }
  0xde   :  { %1207 = vperm.xlu1 %1629, %v1101_v15   ;;  %1202 = vperm.xlu0 %1628, %v1100_v17   ;;  %v1443_v17 = vld [vmem:[%s2485_s3 + $0x10] sm:$0xf] }
  0xe0   :  { %v388_v22 = vpop.f32.mrf.mxu0 }
  0xe1   :  { %v389_v59 = vadd.f32 %v388_v22, %v1931_v28 }
  0xe3   :  { %v452_v3 = vmax.f32 %v389_v59, 0.0 }
  0xe5   :  { %1227 = vperm.xlu2 %1630, %v1105_v25   ;;  %v1451_v25 = vld [vmem:[%s2485_s3 + $0x20] sm:$0xf] }
  0xe6   :  { %1222 = vperm.xlu1 %1629, %v1104_v27   ;;  %1217 = vperm.xlu0 %1628, %v1103_v29   ;;  %v1582_v27 = vld [vmem:[%s2485_s3 + $0x24] sm:$0xf0] }
  0xe8   :  { %v391_v30 = vpop.f32.mrf.mxu0 }
  0xe9   :  { %v392_v54 = vadd.f32 %v391_v30, %v1938_v33  ;;  %v510_v33 = vpack.c.bf16 %v452_v3, %v451_v6  ;;  %v1547_v30 = vld [vmem:[%s2485_s3 + $0xe0] sm:$0xf]  ;;  %v1437_v6 = vld [vmem:[%s2485_s3 + $0x8] sm:$0xf0] }
  0xeb   :  { %v453_v62 = vmax.f32 %v392_v54, 0.0 }
  0xed   :  { %1242 = vperm.xlu2 %1630, %v1108_v32   ;;  %v1606_v32 = vld [vmem:[%s2485_s3 + $0xe4] sm:$0xf0] }
  0xee   :  { %1237 = vperm.xlu1 %1629, %v1107_v34   ;;  %1232 = vperm.xlu0 %1628, %v1106_v35   ;;  %v1452_v34 = vor.u32 %v1582_v27, %v1451_v25  ;;  %v1548_v35 = vor.u32 %v1606_v32, %v1547_v30  ;;  %v1592_v25 = vld [vmem:[%s2485_s3 + $0x74] sm:$0xf0]  ;;  %v2262_v27 = vpop.permute.xlu0 %560  ;;  %v1583_v30 = vld [vmem:[%s2485_s3 + $0x34] sm:$0xf]  ;;  %v1461_v32 = vld [vmem:[%s2485_s3 + $0x38] sm:$0xf0] }
  0xf0   :  { %v393_v36 = vpop.f32.mrf.mxu0 }
  0xf1   :  { %v394_v51 = vadd.f32 %v393_v36, %v1933_v31 }
  0xf3   :  { %v454_v20 = vmax.f32 %v394_v51, 0.0 }
  0xf5   :  { %1257 = vperm.xlu2 %1630, %v1111_v37   ;;  %v511_v31 = vpack.c.bf16 %v454_v20, %v453_v62 }
  0xf6   :  { %1252 = vperm.xlu1 %1629, %v1110_v39   ;;  %1247 = vperm.xlu0 %1628, %v1109_v40   ;;  %v1459_v39 = vld [vmem:[%s2485_s3 + $0x30] sm:$0xf]  ;;  %v1584_v40 = vld [vmem:[%s2485_s3 + $0x34] sm:$0xf0] }
  0xf8   :  { %v396_v41 = vpop.f32.mrf.mxu0 }
  0xf9   :  { %v397_v48 = vadd.f32 %v396_v41, %v1946_v38 }
  0xfb   :  { %v455_v16 = vmax.f32 %v397_v48, 0.0  ;;  %v1460_v48 = vor.u32 %v1584_v40, %v1459_v39  ;;  %v1464_v39 = vor.u32 %v1583_v30, %v1461_v32 }
  0xfd   :  { %1272 = vperm.xlu2 %1630, %v1114_v42   ;;  %v1555_v42 = vld [vmem:[%s2485_s3 + $0xf0] sm:$0xf] }
  0xfe   :  { %1267 = vperm.xlu1 %1629, %v1113_v43   ;;  %1262 = vperm.xlu0 %1628, %v1112_v47   ;;  %v1608_v43 = vld [vmem:[%s2485_s3 + $0xf4] sm:$0xf0] }
  0xff   :  { %v1556_v54 = vor.u32 %v1608_v43, %v1555_v42 }
 0x100   :  { %v398_v49 = vpop.f32.mrf.mxu0 }
 0x101   :  { %v399_v52 = vadd.f32 %v398_v49, %v1961_v46 }
 0x103   :  { %v456_v57 = vmax.f32 %v399_v52, 0.0 }
 0x105   :  { %v512_v60 = vpack.c.bf16 %v456_v57, %v455_v16 }
 0x106   :  { %1347 = vperm.xlu0 %1628, %v1344_v58  }
 0x107   :  { %873 = vmatpush.bf16.msra.mxu1 %v512_v60  ;;  %1610 = vmatpush.bf16.msrb.mxu3 %v512_v60 }
 0x108   :  { %v401_v38 = vpop.f32.mrf.mxu0 }
 0x109   :  { %v402_v46 = vadd.f32 %v401_v38, %v1957_v44  ;;  %v1435_v44 = vld [vmem:[%s2485_s3] sm:$0xf] }
 0x10b   :  { %874 = vmatpush.bf16.msra.mxu1 %v511_v31  ;;  %1611 = vmatpush.bf16.msrb.mxu3 %v511_v31  ;;  %v457_v9 = vmax.f32 %v402_v46, 0.0  ;;  %v1533_v46 = vld [vmem:[%s2485_s3 + $0xc8] sm:$0xf0] }
 0x10f   :  { %875 = vmatpush.bf16.msra.mxu1 %v510_v33  ;;  %1612 = vmatpush.bf16.msrb.mxu3 %v510_v33  ;;  %v1601_v33 = vld [vmem:[%s2485_s3 + $0xc4] sm:$0xf] }
 0x110   :  { %v403_v28 = vpop.f32.mrf.mxu0 }
 0x111   :  { %v404_v8 = vadd.f32 %v403_v28, %v1969_v50  ;;  %v1578_v50 = vld [vmem:[%s2485_s3 + $0x4] sm:$0xf0] }
 0x112   :  { %v1436_v14 = vor.u32 %v1578_v50, %v1435_v44  ;;  %v1579_v44 = vld [vmem:[%s2485_s3 + $0x14] sm:$0xf]  ;;  %v1445_v50 = vld [vmem:[%s2485_s3 + $0x18] sm:$0xf0] }
 0x113   :  { %v458_v19 = vmax.f32 %v404_v8, 0.0  ;;  %876 = vmatpush.bf16.msra.mxu1 %v2058_v61  ;;  %1613 = vmatpush.bf16.msrb.mxu3 %v2058_v61  ;;  %v1536_v8 = vor.u32 %v1601_v33, %v1533_v46  ;;  %v1485_v33 = vld [vmem:[%s2485_s3 + $0x68] sm:$0xf0] }
 0x115   :  { %v2126_v4 = vpack.c.bf16 %v458_v19, %v457_v9  ;;  %v1475_v9 = vld [vmem:[%s2485_s3 + $0x50] sm:$0xf]  ;;  %v1588_v19 = vld [vmem:[%s2485_s3 + $0x54] sm:$0xf0] }
 0x117   :  { %877 = vmatpush.bf16.msra.mxu1 %v2033_v11  ;;  %1614 = vmatpush.bf16.msrb.mxu3 %v2033_v11  ;;  %v1531_v11 = vld [vmem:[%s2485_s3 + $0xc0] sm:$0xf] }
 0x118   :  { %v2130_v10 = vpop.f32.mrf.mxu0 }
 0x11b   :  { %878 = vmatpush.bf16.msra.mxu1 %v1996_v1  ;;  %1615 = vmatpush.bf16.msrb.mxu3 %v1996_v1  ;;  %v1602_v1 = vld [vmem:[%s2485_s3 + $0xc4] sm:$0xf0] }
 0x11c   :  { %v1532_v15 = vor.u32 %v1602_v1, %v1531_v11  ;;  %v1448_v11 = vor.u32 %v1579_v44, %v1445_v50  ;;  %v1523_v50 = vld [vmem:[%s2485_s3 + $0xb0] sm:$0xf] }
 0x11f   :  { %879 = vmatpush.bf16.msra.mxu1 %v1959_v45  ;;  %1616 = vmatpush.bf16.msrb.mxu3 %v1959_v45 }
 0x120   :  { %v408_v61 = vpop.f32.mrf.mxu0 }
 0x123   :  { %880 = vmatpush.bf16.msra.mxu1 %v1926_v26  ;;  %1617 = vmatpush.bf16.msrb.mxu3 %v1926_v26  ;;  %v1539_v26 = vld [vmem:[%s2485_s3 + $0xd0] sm:$0xf] }
 0x126   :  { %881 = vmatmul.bf16.vlgmr.msra.gmra.mxu1 %v1436_v14  ;;  %941 = vmatmul.bf16.vlgmr.msrb.gmra.mxu3 %v1532_v15  ;;  %v1483_v14 = vld [vmem:[%s2485_s3 + $0x60] sm:$0xf]  ;;  %v1590_v15 = vld [vmem:[%s2485_s3 + $0x64] sm:$0xf0] }
 0x127   :  { %1618 = vmatpush.bf16.msra.mxu3 %v2062_v13  ;;  %v1604_v13 = vld [vmem:[%s2485_s3 + $0xd4] sm:$0xf0] }
 0x128   :  { %v411_v45 = vpop.f32.mrf.mxu0  ;;  %v1540_v22 = vor.u32 %v1604_v13, %v1539_v26  ;;  %v1549_v26 = vld [vmem:[%s2485_s3 + $0xe8] sm:$0xf0] }
 0x129   :  { %v412_v59 = vadd.f32 %v411_v45, %v1998_v2  ;;  %v1467_v2 = vld [vmem:[%s2485_s3 + $0x40] sm:$0xf]  ;;  %v1484_v45 = vor.u32 %v1590_v15, %v1483_v14  ;;  %v1591_v14 = vld [vmem:[%s2485_s3 + $0x74] sm:$0xf]  ;;  %v1493_v15 = vld [vmem:[%s2485_s3 + $0x78] sm:$0xf0] }
 0x12b   :  { %1619 = vmatpush.bf16.msra.mxu3 %v2074_v0  ;;  %v1444_v0 = vor.u32 %v1580_v53, %v1443_v17  ;;  %v461_v63 = vmax.f32 %v412_v59, 0.0  ;;  %v1581_v17 = vld [vmem:[%s2485_s3 + $0x24] sm:$0xf]  ;;  %v1453_v53 = vld [vmem:[%s2485_s3 + $0x28] sm:$0xf0] }
 0x12c   :  { %v1456_v13 = vor.u32 %v1581_v17, %v1453_v53  ;;  %v1596_v59 = vld [vmem:[%s2485_s3 + $0x94] sm:$0xf0] }
 0x12f   :  { %1620 = vmatpush.bf16.msra.mxu3 %v2077_v24 }
 0x130   :  { %v413_v21 = vpop.f32.mrf.mxu0 }
 0x131   :  { %v414_v16 = vadd.f32 %v413_v21, %v2006_v7  ;;  %v1605_v21 = vld [vmem:[%s2485_s3 + $0xe4] sm:$0xf] }
 0x136   :  { %886 = vmatmul.bf16.gmra.mxu1 %v1444_v0  ;;  %946 = vmatmul.bf16.gmra.mxu3 %v1540_v22  ;;  %v1552_v0 = vor.u32 %v1605_v21, %v1549_v26  ;;  %v2254_v22 = vpop.permute.xlu2 %555 }
 0x138   :  { %v416_v24 = vpop.f32.mrf.mxu0 }
 0x139   :  { %v417_v49 = vadd.f32 %v416_v24, %v2003_v5  ;;  %v407_v5 = vadd.f32 %v2130_v10, %v1982_v56  ;;  %v1577_v56 = vld [vmem:[%s2485_s3 + $0x4] sm:$0xf]  ;;  %v1476_v10 = vor.u32 %v1588_v19, %v1475_v9  ;;  %v1491_v24 = vld [vmem:[%s2485_s3 + $0x70] sm:$0xf] }
 0x13a   :  { %v1440_v28 = vor.u32 %v1577_v56, %v1437_v6  ;;  %v1589_v6 = vld [vmem:[%s2485_s3 + $0x64] sm:$0xf] }
 0x13b   :  { %v463_v20 = vmax.f32 %v417_v49, 0.0  ;;  %v459_v38 = vmax.f32 %v407_v5, 0.0  ;;  %v1585_v49 = vld [vmem:[%s2485_s3 + $0x44] sm:$0xf]  ;;  %v1587_v5 = vld [vmem:[%s2485_s3 + $0x54] sm:$0xf] }
 0x140   :  { %v418_v29 = vpop.f32.mrf.mxu0 }
 0x141   :  { %v419_v47 = vadd.f32 %v418_v29, %v2017_v12  ;;  %v409_v12 = vadd.f32 %v408_v61, %v1980_v55  ;;  %v1586_v55 = vld [vmem:[%s2485_s3 + $0x44] sm:$0xf0]  ;;  %v1541_v61 = vld [vmem:[%s2485_s3 + $0xd8] sm:$0xf0]  ;;  %v1492_v29 = vor.u32 %v1592_v25, %v1491_v24  ;;  %v1593_v24 = vld [vmem:[%s2485_s3 + $0x84] sm:$0xf] }
 0x142   :  { %v1468_v31 = vor.u32 %v1586_v55, %v1467_v2  ;;  %v1501_v25 = vld [vmem:[%s2485_s3 + $0x88] sm:$0xf0] }
 0x143   :  { %v464_v57 = vmax.f32 %v419_v47, 0.0  ;;  %v460_v7 = vmax.f32 %v409_v12, 0.0  ;;  %v1499_v47 = vld [vmem:[%s2485_s3 + $0x80] sm:$0xf]  ;;  %v1504_v32 = vor.u32 %v1593_v24, %v1501_v25 }
 0x145   :  { %v516_v60 = vpack.c.bf16 %v464_v57, %v463_v20  ;;  %v514_v3 = vpack.c.bf16 %v460_v7, %v459_v38 }
 0x146   :  { %891 = vmatmul.bf16.gmra.mxu1 %v1452_v34  ;;  %951 = vmatmul.bf16.gmra.mxu3 %v1548_v35  ;;  %v1607_v34 = vld [vmem:[%s2485_s3 + $0xf4] sm:$0xf]  ;;  %v1557_v35 = vld [vmem:[%s2485_s3 + $0xf8] sm:$0xf0] }
 0x147   :  { %v1560_v40 = vor.u32 %v1607_v34, %v1557_v35 }
 0x148   :  { %v421_v36 = vpop.f32.mrf.mxu0 }
 0x149   :  { %v422_v37 = vadd.f32 %v421_v36, %v2025_v23  ;;  %v2276_v36 = vpop.permute.xlu2 %570 }
 0x14b   :  { %v465_v51 = vmax.f32 %v422_v37, 0.0  ;;  %v2278_v37 = vpop.permute.xlu1 %565 }
 0x150   :  { %v423_v41 = vpop.f32.mrf.mxu0 }
 0x151   :  { %v424_v23 = vadd.f32 %v423_v41, %v2020_v18  ;;  %v462_v18 = vmax.f32 %v414_v16, 0.0  ;;  %v2280_v41 = vpop.permute.xlu0 %575  ;;  %v2282_v42 = vpop.permute.xlu2 %585 }
 0x153   :  { %v466_v52 = vmax.f32 %v424_v23, 0.0  ;;  %v515_v62 = vpack.c.bf16 %v462_v18, %v461_v63  ;;  %v2284_v43 = vpop.permute.xlu1 %580  ;;  %v1594_v23 = vld [vmem:[%s2485_s3 + $0x84] sm:$0xf0]  ;;  %v1477_v63 = vld [vmem:[%s2485_s3 + $0x58] sm:$0xf0] }
 0x154   :  { %v1480_v7 = vor.u32 %v1587_v5, %v1477_v63 }
 0x155   :  { %v517_v58 = vpack.c.bf16 %v466_v52, %v465_v51  ;;  %v1469_v51 = vld [vmem:[%s2485_s3 + $0x48] sm:$0xf0] }
 0x156   :  { %896 = vmatmul.bf16.gmra.mxu1 %v1460_v48  ;;  %956 = vmatmul.bf16.gmra.mxu3 %v1556_v54  ;;  %v1500_v48 = vor.u32 %v1594_v23, %v1499_v47  ;;  %v1472_v54 = vor.u32 %v1585_v49, %v1469_v51  ;;  %v1595_v49 = vld [vmem:[%s2485_s3 + $0x94] sm:$0xf]  ;;  %v1509_v51 = vld [vmem:[%s2485_s3 + $0x98] sm:$0xf0] }
 0x157   :  { %965 = vmatpush.bf16.msra.mxu2 %v517_v58  ;;  %1621 = vmatpush.bf16.msra.mxu3 %v517_v58  ;;  %v1507_v58 = vld [vmem:[%s2485_s3 + $0x90] sm:$0xf] }
 0x158   :  { %v1508_v12 = vor.u32 %v1596_v59, %v1507_v58 }
 0x159   :  { %v2298_v52 = vpop.permute.xlu0 %590  ;;  %v2300_v16 = vpop.permute.xlu2 %600 }
 0x15b   :  { %966 = vmatpush.bf16.msra.mxu2 %v516_v60  ;;  %1622 = vmatpush.bf16.msra.mxu3 %v516_v60  ;;  %v2302_v57 = vpop.permute.xlu1 %595 }
 0x15f   :  { %967 = vmatpush.bf16.msra.mxu2 %v515_v62  ;;  %1623 = vmatpush.bf16.msra.mxu3 %v515_v62 }
 0x161   :  { %v2310_v20 = vpop.permute.xlu0 %605  ;;  %v2312_v18 = vpop.permute.xlu2 %615 }
 0x163   :  { %968 = vmatpush.bf16.msra.mxu2 %v514_v3  ;;  %1624 = vmatpush.bf16.msra.mxu3 %v514_v3  ;;  %v2314_v60 = vpop.permute.xlu1 %610  ;;  %v1515_v3 = vld [vmem:[%s2485_s3 + $0xa0] sm:$0xf] }
 0x166   :  { %901 = vmatmul.bf16.gmra.mxu1 %v1468_v31  ;;  %v1598_v31 = vld [vmem:[%s2485_s3 + $0xa4] sm:$0xf0] }
 0x167   :  { %969 = vmatpush.bf16.msra.mxu2 %v2126_v4  ;;  %1625 = vmatpush.bf16.msra.mxu3 %v2126_v4  ;;  %v1603_v4 = vld [vmem:[%s2485_s3 + $0xd4] sm:$0xf]  ;;  %v1516_v56 = vor.u32 %v1598_v31, %v1515_v3 }
 0x168   :  { %v1544_v1 = vor.u32 %v1603_v4, %v1541_v61  ;;  %v1600_v4 = vld [vmem:[%s2485_s3 + $0xb4] sm:$0xf0] }
 0x169   :  { %v2322_v62 = vpop.permute.xlu0 %620  ;;  %v2324_v2 = vpop.permute.xlu2 %630 }
 0x16a   :  { %970 = vmatmul.bf16.vlgmr.msra.gmra.mxu2 %v1440_v28  ;;  %1030 = vmatmul.bf16.vlgmr.msra.gmra.mxu3 %v1536_v8  ;;  %v1488_v8 = vor.u32 %v1589_v6, %v1485_v33 }
 0x16b   :  { %v2326_v55 = vpop.permute.xlu1 %625 }
 0x171   :  { %v2340_v46 = vpop.permute.xlu0 %635  ;;  %v2342_v9 = vpop.permute.xlu2 %645 }
 0x173   :  { %v2344_v19 = vpop.permute.xlu1 %640 }
 0x176   :  { %906 = vmatmul.bf16.gmra.mxu1 %v1476_v10 }
 0x179   :  { %v2346_v10 = vpop.permute.xlu0 %650  ;;  %v2354_v61 = vpop.permute.xlu2 %660 }
 0x17a   :  { %975 = vmatmul.bf16.gmra.mxu2 %v1448_v11  ;;  %1035 = vmatmul.bf16.gmra.mxu3 %v1544_v1  ;;  %v1524_v1 = vor.u32 %v1600_v4, %v1523_v50 }
 0x17b   :  { %v2356_v11 = vpop.permute.xlu1 %655 }
 0x181   :  { %v2364_v17 = vpop.permute.xlu0 %665  ;;  %v2366_v21 = vpop.permute.xlu2 %675 }
 0x183   :  { %v2368_v26 = vpop.permute.xlu1 %670 }
 0x186   :  { %911 = vmatmul.bf16.gmra.mxu1 %v1484_v45  ;;  %v1496_v45 = vor.u32 %v1591_v14, %v1493_v15  ;;  %v1597_v14 = vld [vmem:[%s2485_s3 + $0xa4] sm:$0xf]  ;;  %v1517_v15 = vld [vmem:[%s2485_s3 + $0xa8] sm:$0xf0] }
 0x18a   :  { %980 = vmatmul.bf16.gmra.mxu2 %v1456_v13  ;;  %1040 = vmatmul.bf16.gmra.mxu3 %v1552_v0  ;;  %v2370_v13 = vpop.permute.xlu0 %680 }
 0x18b   :  { %v2380_v30 = vpop.permute.xlu1 %685 }
 0x192   :  { %v2382_v34 = vpop.permute.xlu0 %695 }
 0x196   :  { %916 = vmatmul.bf16.gmra.mxu1 %v1492_v29  ;;  %v2378_v29 = vpop.permute.xlu2 %690 }
 0x19a   :  { %985 = vmatmul.bf16.gmra.mxu2 %v1464_v39  ;;  %1045 = vmatmul.bf16.gmra.mxu3 %v1560_v40  ;;  %v2396_v5 = vpop.permute.xlu0 %710 }
 0x19b   :  { %2490 = vst [vmem:[#allocation6_spill] sm:$0xff] %v2396_v5 }
 0x19e   :  { %v2385_v23 = vpop.permute.xlu2 %705 }
 0x1a3   :  { %v882_v38 = vpop.f32.mrf.mxu1 }
 0x1a4   :  { %v883_v35 = vadd.f32 %v882_v38, %v2254_v22 }
 0x1a6   :  { %921 = vmatmul.bf16.gmra.mxu1 %v1500_v48  ;;  %v2387_v48 = vpop.permute.xlu1 %700  ;;  %v1123_v38 = vpop.permute.xlu2 %1122 }
 0x1aa   :  { %990 = vmatmul.bf16.gmra.mxu2 %v1472_v54 }
 0x1ab   :  { %v884_v28 = vpop.f32.mrf.mxu1 }
 0x1ac   :  { %v885_v54 = vadd.f32 %v884_v28, %v2262_v27  ;;  %v1128_v27 = vpop.permute.xlu0 %1127 }
 0x1ae   :  { %v1118_v3 = vpop.permute.xlu1 %1117 }
 0x1b3   :  { %v887_v44 = vpop.f32.mrf.mxu1 }
 0x1b4   :  { %v888_v6 = vadd.f32 %v887_v44, %v2278_v37  ;;  %v1520_v44 = vor.u32 %v1597_v14, %v1517_v15 }
 0x1b6   :  { %926 = vmatmul.bf16.gmra.mxu1 %v1508_v12  ;;  %v1512_v12 = vor.u32 %v1595_v49, %v1509_v51 }
 0x1ba   :  { %995 = vmatmul.bf16.gmra.mxu2 %v1480_v7 }
 0x1bb   :  { %v889_v53 = vpop.f32.mrf.mxu1 }
 0x1c3   :  { %v892_v0 = vpop.f32.mrf.mxu1 }
 0x1c4   :  { %v893_v49 = vadd.f32 %v892_v0, %v2280_v41 }
 0x1c6   :  { %931 = vmatmul.bf16.gmra.mxu1 %v1516_v56 }
 0x1ca   :  { %1000 = vmatmul.bf16.gmra.mxu2 %v1488_v8 }
 0x1cb   :  { %v894_v39 = vpop.f32.mrf.mxu1 }
 0x1d3   :  { %v897_v63 = vpop.f32.mrf.mxu1 }
 0x1d6   :  { %936 = vmatmul.bf16.gmra.mxu1 %v1524_v1 }
 0x1da   :  { %1005 = vmatmul.bf16.gmra.mxu2 %v1496_v45  ;;  %v890_v45 = vadd.f32 %v889_v53, %v2276_v36  ;;  %v1599_v36 = vld [vmem:[%s2485_s3 + $0xb4] sm:$0xf]  ;;  %v1525_v53 = vld [vmem:[%s2485_s3 + $0xb8] sm:$0xf0]  ;;  %s1658_s3 = smov [#allocation3]  }
 0x1db   :  { %v899_v28 = vpop.f32.mrf.mxu1  ;;  %v1528_v0 = vor.u32 %v1599_v36, %v1525_v53  ;;  %s1358_s27 = sshll.u32 %s1658_s3, 4  ;;  %s1359_s27 = int_to_ptr.vmem [resolvable:$true] %s1358_s27 }
 0x1ea   :  { %1010 = vmatmul.bf16.gmra.mxu2 %v1504_v32 }
 0x1ed   :  { %v971_v40 = vpop.f32.mrf.mxu2 }
 0x1ee   :  { %v972_v47 = vadd.f32 %v971_v40, %v883_v35  ;;  %v1133_v35 = vpop.permute.xlu1 %1132 }
 0x1f0   :  { %v1051_v59 = vmax.f32 %v972_v47, 0.0  ;;  %v902_v47 = vpop.f32.mrf.mxu1 }
 0x1f2   :  { %v1275_v31 = vmul.f32 %v1118_v3, %v1051_v59 }
 0x1f5   :  { %v973_v58 = vpop.f32.mrf.mxu2 }
 0x1f6   :  { %v974_v22 = vadd.f32 %v973_v58, %v885_v54 }
 0x1f8   :  { %v1052_v7 = vmax.f32 %v974_v22, 0.0  ;;  %v1138_v22 = vpop.permute.xlu2 %1137  ;;  %v904_v3 = vpop.f32.mrf.mxu1 }
 0x1fa   :  { %v1276_v56 = vmul.f32 %v1123_v38, %v1052_v7  ;;  %1015 = vmatmul.bf16.gmra.mxu2 %v1512_v12  ;;  %v895_v7 = vadd.f32 %v894_v39, %v2284_v43  ;;  %v900_v39 = vadd.f32 %v899_v28, %v2298_v52  ;;  %v905_v28 = vadd.f32 %v904_v3, %v2300_v16 }
 0x1fc   :  { %v1307_v33 = vadd.f32 %v1276_v56, %v1275_v31 }
 0x1fd   :  { %v976_v8 = vpop.f32.mrf.mxu2 }
 0x1fe   :  { %v977_v50 = vadd.f32 %v976_v8, %v888_v6  ;;  %v1143_v6 = vpop.permute.xlu0 %1142  ;;  %v2414_v8 = vpop.f32.mrf.mxu3 }
 0x200   :  { %v1053_v4 = vmax.f32 %v977_v50, 0.0  ;;  %v898_v50 = vadd.f32 %v897_v63, %v2282_v42  ;;  %v907_v14 = vpop.f32.mrf.mxu1  ;;  %v903_v42 = vadd.f32 %v902_v47, %v2302_v57 }
 0x201   :  { %v908_v57 = vadd.f32 %v907_v14, %v2310_v20 }
 0x202   :  { %v1277_v1 = vmul.f32 %v1128_v27, %v1053_v4 }
 0x204   :  { %v1308_v24 = vadd.f32 %v1307_v33, %v1277_v1 }
 0x205   :  { %v978_v25 = vpop.f32.mrf.mxu2 }
 0x206   :  { %v979_v37 = vadd.f32 %v978_v25, %v890_v45  ;;  %v1148_v45 = vpop.permute.xlu1 %1147  ;;  %v2418_v25 = vpop.f32.mrf.mxu3 }
 0x208   :  { %v1054_v32 = vmax.f32 %v979_v37, 0.0 }
 0x20a   :  { %v1278_v40 = vmul.f32 %v1133_v35, %v1054_v32  ;;  %1020 = vmatmul.bf16.gmra.mxu2 %v1520_v44  ;;  %v1153_v35 = vpop.permute.xlu2 %1152 }
 0x20c   :  { %v1309_v51 = vadd.f32 %v1308_v24, %v1278_v40  ;;  %v909_v40 = vpop.f32.mrf.mxu1 }
 0x20d   :  { %v981_v54 = vpop.f32.mrf.mxu2  ;;  %v910_v16 = vadd.f32 %v909_v40, %v2314_v60 }
 0x20e   :  { %v982_v58 = vadd.f32 %v981_v54, %v893_v49 }
 0x210   :  { %v1055_v59 = vmax.f32 %v982_v58, 0.0  ;;  %v2421_v58 = vpop.f32.mrf.mxu3 }
 0x212   :  { %v1279_v12 = vmul.f32 %v1138_v22, %v1055_v59  ;;  %v1158_v22 = vpop.permute.xlu0 %1157 }
 0x214   :  { %v1310_v38 = vadd.f32 %v1309_v51, %v1279_v12  ;;  %v912_v52 = vpop.f32.mrf.mxu1 }
 0x215   :  { %v983_v31 = vpop.f32.mrf.mxu2  ;;  %v913_v20 = vadd.f32 %v912_v52, %v2312_v18 }
 0x216   :  { %v984_v41 = vadd.f32 %v983_v31, %v895_v7  ;;  %v1163_v31 = vpop.permute.xlu1 %1162 }
 0x218   :  { %v1056_v56 = vmax.f32 %v984_v41, 0.0  ;;  %v2424_v41 = vpop.f32.mrf.mxu3 }
 0x21a   :  { %v1280_v33 = vmul.f32 %v1143_v6, %v1056_v56  ;;  %1025 = vmatmul.bf16.gmra.mxu2 %v1528_v0 }
 0x21c   :  { %v1311_v4 = vadd.f32 %v1310_v38, %v1280_v33  ;;  %v914_v56 = vpop.f32.mrf.mxu1 }
 0x21d   :  { %v986_v27 = vpop.f32.mrf.mxu2 }
 0x21e   :  { %v987_v1 = vadd.f32 %v986_v27, %v898_v50 }
 0x220   :  { %v1057_v15 = vmax.f32 %v987_v1, 0.0  ;;  %v2427_v1 = vpop.f32.mrf.mxu3 }
 0x222   :  { %v1281_v43 = vmul.f32 %v1148_v45, %v1057_v15 }
 0x224   :  { %v1312_v24 = vadd.f32 %v1311_v4, %v1281_v43  ;;  %v1168_v4 = vpop.permute.xlu2 %1167  ;;  %v917_v43 = vpop.f32.mrf.mxu1 }
 0x225   :  { %v988_v37 = vpop.f32.mrf.mxu2 }
 0x226   :  { %v989_v44 = vadd.f32 %v988_v37, %v900_v39 }
 0x228   :  { %v1058_v32 = vmax.f32 %v989_v44, 0.0  ;;  %v2431_v44 = vpop.f32.mrf.mxu3 }
 0x22a   :  { %v1282_v49 = vmul.f32 %v1153_v35, %v1058_v32 }
 0x22c   :  { %v1313_v63 = vadd.f32 %v1312_v24, %v1282_v49  ;;  %v1173_v24 = vpop.permute.xlu0 %1172 }
 0x22d   :  { %v991_v51 = vpop.f32.mrf.mxu2 }
 0x22e   :  { %v992_v54 = vadd.f32 %v991_v51, %v903_v42  ;;  %v1178_v42 = vpop.permute.xlu1 %1177 }
 0x230   :  { %v1059_v59 = vmax.f32 %v992_v54, 0.0  ;;  %v2433_v40 = vpop.f32.mrf.mxu3 }
 0x231   :  { %2491 = vst [vmem:[#allocation7_spill] sm:$0xff] %v2433_v40 }
 0x232   :  { %v1283_v12 = vmul.f32 %v1158_v22, %v1059_v59 }
 0x234   :  { %v1314_v36 = vadd.f32 %v1313_v63, %v1283_v12  ;;  %v919_v63 = vpop.f32.mrf.mxu1 }
 0x235   :  { %v993_v53 = vpop.f32.mrf.mxu2 }
 0x236   :  { %v994_v7 = vadd.f32 %v993_v53, %v905_v28 }
 0x238   :  { %v1060_v38 = vmax.f32 %v994_v7, 0.0  ;;  %v2435_v12 = vpop.f32.mrf.mxu3 }
 0x239   :  { %2492 = vst [vmem:[#allocation8_spill] sm:$0xff] %v2435_v12 }
 0x23a   :  { %v1284_v0 = vmul.f32 %v1163_v31, %v1060_v38 }
 0x23c   :  { %v1315_v47 = vadd.f32 %v1314_v36, %v1284_v0  ;;  %v922_v59 = vpop.f32.mrf.mxu1  ;;  %v1183_v0 = vpop.permute.xlu2 %1182 }
 0x23d   :  { %v996_v6 = vpop.f32.mrf.mxu2 }
 0x23e   :  { %v997_v33 = vadd.f32 %v996_v6, %v908_v57  ;;  %v1188_v6 = vpop.permute.xlu0 %1187 }
 0x240   :  { %v1061_v50 = vmax.f32 %v997_v33, 0.0  ;;  %v2437_v18 = vpop.f32.mrf.mxu3 }
 0x242   :  { %v1285_v27 = vmul.f32 %v1168_v4, %v1061_v50  ;;  %v1193_v50 = vpop.permute.xlu1 %1192 }
 0x244   :  { %v1316_v3 = vadd.f32 %v1315_v47, %v1285_v27  ;;  %v924_v28 = vpop.f32.mrf.mxu1  ;;  %v1198_v27 = vpop.permute.xlu2 %1197 }
 0x245   :  { %v998_v15 = vpop.f32.mrf.mxu2  ;;  %v925_v5 = vadd.f32 %v924_v28, %v2344_v19 }
 0x246   :  { %v999_v45 = vadd.f32 %v998_v15, %v910_v16  ;;  %v1203_v15 = vpop.permute.xlu0 %1202 }
 0x248   :  { %v1062_v39 = vmax.f32 %v999_v45, 0.0  ;;  %v2439_v7 = vpop.f32.mrf.mxu3  ;;  %v918_v45 = vadd.f32 %v917_v43, %v2326_v55 }
 0x24a   :  { %v1286_v37 = vmul.f32 %v1173_v24, %v1062_v39 }
 0x24c   :  { %v1317_v14 = vadd.f32 %v1316_v3, %v1286_v37  ;;  %v927_v53 = vpop.f32.mrf.mxu1  ;;  %v915_v3 = vadd.f32 %v914_v56, %v2322_v62 }
 0x24d   :  { %v1001_v32 = vpop.f32.mrf.mxu2  ;;  %v928_v55 = vadd.f32 %v927_v53, %v2342_v9 }
 0x24e   :  { %v1002_v35 = vadd.f32 %v1001_v32, %v913_v20  ;;  %v920_v20 = vadd.f32 %v919_v63, %v2324_v2  ;;  %v1208_v32 = vpop.permute.xlu1 %1207 }
 0x250   :  { %v1063_v49 = vmax.f32 %v1002_v35, 0.0  ;;  %v2441_v57 = vpop.f32.mrf.mxu3  ;;  %v1213_v35 = vpop.permute.xlu2 %1212 }
 0x252   :  { %v1287_v51 = vmul.f32 %v1178_v42, %v1063_v49  ;;  %v923_v49 = vadd.f32 %v922_v59, %v2340_v46  ;;  %v1218_v46 = vpop.permute.xlu0 %1217 }
 0x254   :  { %v1318_v54 = vadd.f32 %v1317_v14, %v1287_v51  ;;  %v929_v31 = vpop.f32.mrf.mxu1 }
 0x255   :  { %v1003_v60 = vpop.f32.mrf.mxu2  ;;  %v930_v2 = vadd.f32 %v929_v31, %v2346_v10 }
 0x256   :  { %v1004_v39 = vadd.f32 %v1003_v60, %v915_v3 }
 0x258   :  { %v2443_v16 = vpop.f32.mrf.mxu3  ;;  %v1064_v42 = vmax.f32 %v1004_v39, 0.0  ;;  %v1228_v53 = vpop.permute.xlu2 %1227 }
 0x25a   :  { %v1288_v43 = vmul.f32 %v1183_v0, %v1064_v42 }
 0x25c   :  { %v932_v33 = vpop.f32.mrf.mxu1  ;;  %v1319_v39 = vadd.f32 %v1318_v54, %v1288_v43 }
 0x25d   :  { %v1006_v22 = vpop.f32.mrf.mxu2  ;;  %v933_v59 = vadd.f32 %v932_v33, %v2356_v11 }
 0x25e   :  { %v1007_v14 = vadd.f32 %v1006_v22, %v918_v45 }
 0x260   :  { %v2449_v12 = vpop.f32.mrf.mxu3  ;;  %v1065_v62 = vmax.f32 %v1007_v14, 0.0 }
 0x262   :  { %v1289_v63 = vmul.f32 %v1188_v6, %v1065_v62 }
 0x264   :  { %v934_v24 = vpop.f32.mrf.mxu1  ;;  %v1320_v0 = vadd.f32 %v1319_v39, %v1289_v63 }
 0x265   :  { %v1008_v36 = vpop.f32.mrf.mxu2  ;;  %v935_v9 = vadd.f32 %v934_v24, %v2354_v61  ;;  %v1233_v24 = vpop.permute.xlu0 %1232 }
 0x266   :  { %v1009_v51 = vadd.f32 %v1008_v36, %v920_v20 }
 0x268   :  { %v1066_v60 = vmax.f32 %v1009_v51, 0.0  ;;  %v1043_v10 = vpop.f32.mrf.mxu3 }
 0x26a   :  { %v1290_v20 = vmul.f32 %v1193_v50, %v1066_v60 }
 0x26c   :  { %v937_v36 = vpop.f32.mrf.mxu1 }
 0x26d   :  { %v1011_v52 = vpop.f32.mrf.mxu2  ;;  %v938_v31 = vadd.f32 %v937_v36, %v2364_v17  ;;  %v953_v36 = vadd.f32 %v2427_v1, %v2382_v34 }
 0x26e   :  { %v1012_v56 = vadd.f32 %v1011_v52, %v923_v49  ;;  %v1223_v52 = vpop.permute.xlu1 %1222 }
 0x270   :  { %v1067_v22 = vmax.f32 %v1012_v56, 0.0  ;;  %v1046_v63 = vpop.f32.mrf.mxu3 }
 0x274   :  { %v939_v56 = vpop.f32.mrf.mxu1 }
 0x275   :  { %v1013_v38 = vpop.f32.mrf.mxu2  ;;  %v940_v60 = vadd.f32 %v939_v56, %v2368_v26 }
 0x276   :  { %v1014_v3 = vadd.f32 %v1013_v38, %v925_v5  ;;  %v1291_v5 = vmul.f32 %v1198_v27, %v1067_v22  ;;  %v943_v27 = vadd.f32 %v2414_v8, %v2366_v21  ;;  %v1238_v43 = vpop.permute.xlu1 %1237 }
 0x278   :  { %v1068_v19 = vmax.f32 %v1014_v3, 0.0 }
 0x27a   :  { %v1292_v6 = vmul.f32 %v1203_v15, %v1068_v19  ;;  %v1243_v15 = vpop.permute.xlu2 %1242  ;;  %v955_v19 = vadd.f32 %v2431_v44, %v2387_v48 }
 0x27c   :  { %v1044_v1 = vadd.f32 %v1043_v10, %v955_v19 }
 0x27d   :  { %v1016_v47 = vpop.f32.mrf.mxu2 }
 0x27e   :  { %v1017_v45 = vadd.f32 %v1016_v47, %v928_v55  ;;  %v1321_v47 = vadd.f32 %v1320_v0, %v1290_v20 }
 0x280   :  { %v1069_v38 = vmax.f32 %v1017_v45, 0.0  ;;  %v1322_v54 = vadd.f32 %v1321_v47, %v1291_v5  ;;  %v1048_v47 = vpop.f32.mrf.mxu3 }
 0x282   :  { %v1293_v50 = vmul.f32 %v1208_v32, %v1069_v38  ;;  %v1323_v51 = vadd.f32 %v1322_v54, %v1292_v6  ;;  %v1032_v32 = vadd.f32 %v2437_v18, %v943_v27  ;;  %v2494_v38 = vld [vmem:[#allocation6_spill] sm:$0xff] }
 0x285   :  { %v1018_v4 = vpop.f32.mrf.mxu2 }
 0x286   :  { %v1019_v28 = vadd.f32 %v1018_v4, %v930_v2  ;;  %v948_v2 = vadd.f32 %v2421_v58, %v2380_v30 }
 0x288   :  { %v1070_v49 = vmax.f32 %v1019_v28, 0.0  ;;  %v1037_v18 = vadd.f32 %v2441_v57, %v948_v2  ;;  %v1253_v57 = vpop.permute.xlu1 %1252 }
 0x28a   :  { %v1294_v62 = vmul.f32 %v1213_v35, %v1070_v49 }
 0x28d   :  { %v1021_v37 = vpop.f32.mrf.mxu2 }
 0x28e   :  { %v1022_v14 = vadd.f32 %v1021_v37, %v933_v59  ;;  %v1324_v37 = vadd.f32 %v1323_v51, %v1293_v50 }
 0x290   :  { %v1071_v42 = vmax.f32 %v1022_v14, 0.0  ;;  %v1325_v3 = vadd.f32 %v1324_v37, %v1294_v62  ;;  %v2495_v14 = vld [vmem:[#allocation8_spill] sm:$0xff] }
 0x292   :  { %v1295_v55 = vmul.f32 %v1218_v46, %v1071_v42 }
 0x294   :  { %v1326_v8 = vadd.f32 %v1325_v3, %v1295_v55 }
 0x295   :  { %v1023_v40 = vpop.f32.mrf.mxu2 }
 0x296   :  { %v1024_v11 = vadd.f32 %v1023_v40, %v935_v9  ;;  %v945_v40 = vadd.f32 %v2418_v25, %v2370_v13  ;;  %v950_v13 = vadd.f32 %v2424_v41, %v2378_v29  ;;  %v1075_v25 = vmax.f32 %v1032_v32, 0.0  ;;  %v2493_v9 = vld [vmem:[#allocation7_spill] sm:$0xff] }
 0x297   :  { %v1042_v29 = vadd.f32 %v2449_v12, %v953_v36  ;;  %v1080_v12 = vmax.f32 %v1044_v1, 0.0 }
 0x298   :  { %v1072_v61 = vmax.f32 %v1024_v11, 0.0  ;;  %v1034_v21 = vadd.f32 %v2439_v7, %v945_v40  ;;  %v1039_v30 = vadd.f32 %v2443_v16, %v950_v13  ;;  %v1248_v7 = vpop.permute.xlu0 %1247  ;;  %v1299_v28 = vmul.f32 %v1238_v43, %v1075_v25  ;;  %v1258_v16 = vpop.permute.xlu2 %1257 }
 0x299   :  { %v1079_v48 = vmax.f32 %v1042_v29, 0.0 }
 0x29a   :  { %v1296_v35 = vmul.f32 %v1223_v52, %v1072_v61  ;;  %v1076_v39 = vmax.f32 %v1034_v21, 0.0  ;;  %v1077_v52 = vmax.f32 %v1037_v18, 0.0  ;;  %v1078_v34 = vmax.f32 %v1039_v30, 0.0  ;;  %v1268_v61 = vpop.permute.xlu1 %1267 }
 0x29b   :  { %v1303_v50 = vmul.f32 %v1258_v16, %v1079_v48 }
 0x29c   :  { %v1327_v59 = vadd.f32 %v1326_v8, %v1296_v35  ;;  %v1300_v0 = vmul.f32 %v1243_v15, %v1076_v39  ;;  %v1301_v6 = vmul.f32 %v1248_v7, %v1077_v52  ;;  %v1302_v11 = vmul.f32 %v1253_v57, %v1078_v34 }
 0x29d   :  { %v1026_v33 = vpop.f32.mrf.mxu2 }
 0x29e   :  { %v1027_v4 = vadd.f32 %v1026_v33, %v938_v31  ;;  %v960_v31 = vadd.f32 %v2495_v14, %v2494_v38 }
 0x2a0   :  { %v1073_v17 = vmax.f32 %v1027_v4, 0.0  ;;  %v1049_v33 = vadd.f32 %v1048_v47, %v960_v31  ;;  %v1263_v4 = vpop.permute.xlu0 %1262  ;;  %v1273_v27 = vpop.permute.xlu2 %1272 }
 0x2a1   :  { %v1304_v51 = vmul.f32 %v1263_v4, %v1080_v12 }
 0x2a2   :  { %v1297_v45 = vmul.f32 %v1228_v53, %v1073_v17  ;;  %v958_v53 = vadd.f32 %v2493_v9, %v2385_v23  ;;  %v1082_v10 = vmax.f32 %v1049_v33, 0.0 }
 0x2a4   :  { %v1328_v58 = vadd.f32 %v1327_v59, %v1297_v45  ;;  %v1047_v44 = vadd.f32 %v1046_v63, %v958_v53  ;;  %v1306_v37 = vmul.f32 %v1273_v27, %v1082_v10 }
 0x2a5   :  { %v1028_v22 = vpop.f32.mrf.mxu2 }
 0x2a6   :  { %v1029_v46 = vadd.f32 %v1028_v22, %v940_v60  ;;  %v1081_v42 = vmax.f32 %v1047_v44, 0.0 }
 0x2a8   :  { %v1074_v26 = vmax.f32 %v1029_v46, 0.0  ;;  %v1348_v60 = vpop.permute.xlu0 %1347 }
 0x2a9   :  { %v1350_v35 = vperm.slane %v1348_v60, 0 }
 0x2aa   :  { %v1298_v20 = vmul.f32 %v1233_v24, %v1074_v26  ;;  %v1305_v24 = vmul.f32 %v1268_v61, %v1081_v42 }
 0x2ac   :  { %v1329_v41 = vadd.f32 %v1328_v58, %v1298_v20 }
 0x2ae   :  { %v1330_v5 = vadd.f32 %v1329_v41, %v1299_v28 }
 0x2b0   :  { %v1331_v49 = vadd.f32 %v1330_v5, %v1300_v0 }
 0x2b2   :  { %v1332_v54 = vadd.f32 %v1331_v49, %v1301_v6 }
 0x2b4   :  { %v1333_v23 = vadd.f32 %v1332_v54, %v1302_v11 }
 0x2b6   :  { %v1334_v62 = vadd.f32 %v1333_v23, %v1303_v50 }
 0x2b8   :  { %v1335_v56 = vadd.f32 %v1334_v62, %v1304_v51 }
 0x2ba   :  { %v1336_v55 = vadd.f32 %v1335_v56, %v1305_v24 }
 0x2bc   :  { %v1337_v17 = vadd.f32 %v1336_v55, %v1306_v37 }
 0x2be   :  { %v1338_v43 = vrot.slane %v1337_v17, 4 }
 0x2c0   :  { %v1339_v40 = vadd.f32 %v1338_v43, %v1337_v17 }
 0x2c2   :  { %v1340_v15 = vrot.slane %v1339_v40, 2 }
 0x2c4   :  { %v1341_v32 = vadd.f32 %v1340_v15, %v1339_v40 }
 0x2c6   :  { %v1342_v3 = vrot.slane %v1341_v32, 1 }
 0x2c8   :  { %v1343_v2 = vadd.f32 %v1342_v3, %v1341_v32 }
 0x2ca   :  { %v1351_v63 = vadd.f32 %v1350_v35, %v1343_v2 }
 0x2cc   :  { %1352 = vst [vmem:[#allocation3] sm:$0x1] %v1351_v63 }
 0x2cd   :  { %1363 = dma.vmem_to_hbm [thread:$0]  %s1359_s27, 16, %s1361_s30, [#allocation4]  }
 0x2ce   :  { %1655 = dma.done.wait [#allocation4], 16  }
 0x2cf   :  { %1656 = vsyncadd [#allocation4], 4294967280 }
 0x2d0   :  { %1368 = vsyncpa [#allocation4], 1 }

</bundles_post_ra>
